<compile_context>
chip_gen: v7x
topology: tpu7x:2x2x1
jax: 0.10.0
libtpu: 0.0.40
codegen_flags: <defaults>
</compile_context>

<pallas_src>
import jax
import jax.numpy as jnp
from jax.experimental import pallas as pl
from jax.experimental.pallas import tpu as pltpu  # noqa: F401  (TPU backend)

# ----- model hyper-parameters (small, consistent with the module) -----
B = 2          # batch
N = 16         # sequence length (tokens)
C = 32         # embedding dim
H = 4          # num_heads
D = C // H     # head dim


def _linear_attn_kernel(x_ref, wqkv_ref, wproj_ref, bproj_ref, hmask_ref,
                        out_ref, ctx_ref):
    # x_ref    : (B*N, C)   flattened tokens for both batches
    # wqkv_ref : (C, 3C)    fused qkv weight
    # wproj_ref: (C, C)     output projection weight
    # bproj_ref: (1, C)     output projection bias
    # hmask_ref: (C, C)     block-diagonal ones (one DxD block per head)
    # out_ref  : (B*N, C)
    # ctx_ref  : (B, C, C)  per-batch block-diagonal context matrix
    x = x_ref[...]
    hmask = hmask_ref[...]

    # Fused QKV projection for both batches at once (single MXU matmul).
    qkv = jnp.dot(x, wqkv_ref[...], preferred_element_type=jnp.float32)  # (B*N, 3C)
    q = qkv[:, 0 * C:1 * C]
    k = qkv[:, 1 * C:2 * C]
    v = qkv[:, 2 * C:3 * C]

    # --- softmax(q) over each D-wide head segment, all heads & batches fused ---
    # Shift by the full-row max (constant within every head segment, so each
    # per-segment softmax is unchanged); segmented sums via one matmul with the
    # block-diagonal ones mask instead of H tiny cross-lane reductions.
    qe = jnp.exp(q - jnp.max(q, axis=-1, keepdims=True))
    qden = jnp.dot(qe, hmask, preferred_element_type=jnp.float32)        # (B*N, C)
    qs = qe * pl.reciprocal(qden, approx=True)                           # EUP vrcp

    ys = []
    for b in range(B):                          # static unroll over batch (B = 2)
        lo, hi = b * N, (b + 1) * N
        k_b = k[lo:hi, :]                       # (N, C)
        v_b = v[lo:hi, :]                       # (N, C)

        # --- softmax(k) over the sequence axis: sublane-friendly reductions ---
        ke = jnp.exp(k_b - jnp.max(k_b, axis=0, keepdims=True))
        kden = jnp.sum(ke, axis=0, keepdims=True)
        ks_b = ke * pl.reciprocal(kden, approx=True)

        # Full C x C gram; the per-head contexts are its diagonal DxD blocks.
        g = jnp.dot(ks_b.T, v_b, preferred_element_type=jnp.float32)     # (C, C)
        g = g * hmask                                                    # blockdiag(ctx)
        ctx_ref[b, :, :] = g

        # y_b = q_b @ blockdiag(ctx)  ==  per-head q_h @ ctx_h, no 8-lane slicing.
        ys.append(jnp.dot(qs[lo:hi, :], g, preferred_element_type=jnp.float32))

    y = jnp.concatenate(ys, axis=0)             # (B*N, C): tile-aligned sublane concat

    # Fused output projection for both batches + bias.
    out_ref[...] = (jnp.dot(y, wproj_ref[...], preferred_element_type=jnp.float32)
                    + bproj_ref[...])


@jax.jit
def efficient_attention(x, w_qkv, w_proj, b_proj):
    """x: (B, N, C) f32 -> (out (B, N, C), context (B, H, D, D))."""
    x2d = x.reshape(B * N, C)
    b2d = b_proj.reshape(1, C)
    idx = jnp.arange(C)
    head_mask = (idx[:, None] // D == idx[None, :] // D).astype(jnp.float32)

    out2d, ctx_full = pl.pallas_call(
        _linear_attn_kernel,
        out_shape=(
            jax.ShapeDtypeStruct((B * N, C), jnp.float32),
            jax.ShapeDtypeStruct((B, C, C), jnp.float32),
        ),
    )(x2d, w_qkv, w_proj, b2d, head_mask)

    out = out2d.reshape(B, N, C)
    # Per-head contexts are the diagonal DxD blocks of the per-batch gram matrix.
    ctx = jnp.stack(
        [ctx_full[:, h * D:(h + 1) * D, h * D:(h + 1) * D] for h in range(H)],
        axis=1)                                  # (B, H, D, D)
    return out, ctx


def efficient_attention_ref(x, w_qkv, w_proj, b_proj):
    """Pure-JAX reference mirroring the PyTorch forward exactly."""
    Bx, Nx, Cx = x.shape
    qkv = x @ w_qkv                                              # (B, N, 3C)
    qkv = qkv.reshape(Bx, Nx, 3, H, D).transpose(2, 0, 3, 1, 4)  # (3, B, H, N, D)
    q, k, v = qkv[0], qkv[1], qkv[2]
    q = jax.nn.softmax(q, axis=-1)
    k = jax.nn.softmax(k, axis=-2)
    context = jnp.einsum("bhnd,bhne->bhde", k, v)                # (B, H, D, D)
    y = jnp.einsum("bhnd,bhde->bhne", q, context)                # (B, H, N, D)
    y = y.transpose(0, 2, 1, 3).reshape(Bx, Nx, Cx)
    out = y @ w_proj + b_proj
    return out, context


if __name__ == "__main__":
    key = jax.random.PRNGKey(0)
    kx, kw1, kw2, kb = jax.random.split(key, 4)

    x = jax.random.normal(kx, (B, N, C), dtype=jnp.float32)
    w_qkv = 0.02 * jax.random.normal(kw1, (C, 3 * C), dtype=jnp.float32)
    w_proj = 0.02 * jax.random.normal(kw2, (C, C), dtype=jnp.float32)
    b_proj = 0.01 * jax.random.normal(kb, (C,), dtype=jnp.float32)

    out, ctx = efficient_attention(x, w_qkv, w_proj, b_proj)
    out = jax.block_until_ready(out)
    ctx = jax.block_until_ready(ctx)

    out_exp, ctx_exp = efficient_attention_ref(x, w_qkv, w_proj, b_proj)
    assert out.shape == (B, N, C) and ctx.shape == (B, H, D, D)
    assert jnp.allclose(out, out_exp, atol=1e-2, rtol=1e-2)
    assert jnp.allclose(ctx, ctx_exp, atol=1e-2, rtol=1e-2)

    print("KERNEL_OK")
</pallas_src>

<mosaic_0001>
module attributes {stable_mosaic.version = 11 : i64} {
  func.func @_linear_attn_kernel(%arg0: memref<32x32xf32, #tpu.memory_space<vmem>>, %arg1: memref<32x96xf32, #tpu.memory_space<vmem>>, %arg2: memref<32x32xf32, #tpu.memory_space<vmem>>, %arg3: memref<1x32xf32, #tpu.memory_space<vmem>>, %arg4: memref<32x32xf32, #tpu.memory_space<vmem>>, %arg5: memref<32x32xf32, #tpu.memory_space<vmem>>, %arg6: memref<2x32x32xf32, #tpu.memory_space<vmem>>) attributes {dimension_semantics = [], scalar_prefetch = 0 : i64, scratch_operands = 0 : i64, tpu.core_type = #tpu.core_type<tc>} {
    %c0 = arith.constant 0 : index
    %c0_0 = arith.constant 0 : index
    %0 = vector.load %arg0[%c0, %c0_0] : memref<32x32xf32, #tpu.memory_space<vmem>>, vector<32x32xf32>
    %c0_1 = arith.constant 0 : index
    %c0_2 = arith.constant 0 : index
    %1 = vector.load %arg4[%c0_1, %c0_2] : memref<32x32xf32, #tpu.memory_space<vmem>>, vector<32x32xf32>
    %c0_3 = arith.constant 0 : index
    %c0_4 = arith.constant 0 : index
    %2 = vector.load %arg1[%c0_3, %c0_4] : memref<32x96xf32, #tpu.memory_space<vmem>>, vector<32x96xf32>
    %cst = arith.constant dense<0.000000e+00> : vector<32x96xf32>
    %3 = tpu.matmul %0, %2, %cst {dimension_numbers = #tpu.dot_dimension_numbers<[1], [0], [0], [1], [0, 0, 1, 1], [], []>} : vector<32x32xf32>, vector<32x96xf32>, vector<32x96xf32> -> vector<32x96xf32>
    %4 = vector.extract_strided_slice %3 {offsets = [0, 0], sizes = [32, 32], strides = [1, 1]} : vector<32x96xf32> to vector<32x32xf32>
    %5 = vector.extract_strided_slice %3 {offsets = [0, 32], sizes = [32, 32], strides = [1, 1]} : vector<32x96xf32> to vector<32x32xf32>
    %6 = vector.extract_strided_slice %3 {offsets = [0, 64], sizes = [32, 32], strides = [1, 1]} : vector<32x96xf32> to vector<32x32xf32>
    %cst_5 = arith.constant dense<0xFF800000> : vector<32xf32>
    %7 = vector.multi_reduction <maximumf>, %4, %cst_5 [1] : vector<32x32xf32> to vector<32xf32>
    %8 = vector.shape_cast %7 : vector<32xf32> to vector<32x1xf32>
    %9 = vector.broadcast %8 : vector<32x1xf32> to vector<32x32xf32>
    %10 = arith.subf %4, %9 : vector<32x32xf32>
    %11 = math.exp %10 : vector<32x32xf32>
    %cst_6 = arith.constant dense<0.000000e+00> : vector<32x32xf32>
    %12 = tpu.matmul %11, %1, %cst_6 {dimension_numbers = #tpu.dot_dimension_numbers<[1], [0], [0], [1], [0, 0, 1, 1], [], []>} : vector<32x32xf32>, vector<32x32xf32>, vector<32x32xf32> -> vector<32x32xf32>
    %13 = tpu.reciprocal %12 {approx = true} : vector<32x32xf32> -> vector<32x32xf32>
    %14 = arith.mulf %11, %13 : vector<32x32xf32>
    %15 = vector.extract_strided_slice %5 {offsets = [0, 0], sizes = [16, 32], strides = [1, 1]} : vector<32x32xf32> to vector<16x32xf32>
    %16 = vector.extract_strided_slice %6 {offsets = [0, 0], sizes = [16, 32], strides = [1, 1]} : vector<32x32xf32> to vector<16x32xf32>
    %cst_7 = arith.constant dense<0xFF800000> : vector<32xf32>
    %17 = vector.multi_reduction <maximumf>, %15, %cst_7 [0] : vector<16x32xf32> to vector<32xf32>
    %18 = vector.shape_cast %17 : vector<32xf32> to vector<1x32xf32>
    %19 = vector.broadcast %18 : vector<1x32xf32> to vector<16x32xf32>
    %20 = arith.subf %15, %19 : vector<16x32xf32>
    %21 = math.exp %20 : vector<16x32xf32>
    %cst_8 = arith.constant dense<0.000000e+00> : vector<32xf32>
    %22 = vector.multi_reduction <add>, %21, %cst_8 [0] : vector<16x32xf32> to vector<32xf32>
    %23 = vector.shape_cast %22 : vector<32xf32> to vector<1x32xf32>
    %24 = tpu.reciprocal %23 {approx = true} : vector<1x32xf32> -> vector<1x32xf32>
    %25 = vector.broadcast %24 : vector<1x32xf32> to vector<16x32xf32>
    %26 = arith.mulf %21, %25 : vector<16x32xf32>
    %27 = tpu.transpose %26, [1, 0] : vector<16x32xf32> -> vector<32x16xf32>
    %cst_9 = arith.constant dense<0.000000e+00> : vector<32x32xf32>
    %28 = tpu.matmul %27, %16, %cst_9 {dimension_numbers = #tpu.dot_dimension_numbers<[1], [0], [0], [1], [0, 0, 1, 1], [], []>} : vector<32x16xf32>, vector<16x32xf32>, vector<32x32xf32> -> vector<32x32xf32>
    %29 = arith.mulf %28, %1 : vector<32x32xf32>
    %c0_10 = arith.constant 0 : index
    %c0_11 = arith.constant 0 : index
    %c0_12 = arith.constant 0 : index
    %30 = vector.load %arg6[%c0_10, %c0_11, %c0_12] : memref<2x32x32xf32, #tpu.memory_space<vmem>>, vector<1x32x32xf32>
    %31 = vector.shape_cast %30 : vector<1x32x32xf32> to vector<32x32xf32>
    %32 = vector.shape_cast %29 : vector<32x32xf32> to vector<1x32x32xf32>
    tpu.vector_store %arg6[%c0_10, %c0_11, %c0_12], %32 {strides = array<i32>} : memref<2x32x32xf32, #tpu.memory_space<vmem>>, vector<1x32x32xf32>,
    %33 = vector.extract_strided_slice %14 {offsets = [0, 0], sizes = [16, 32], strides = [1, 1]} : vector<32x32xf32> to vector<16x32xf32>
    %cst_13 = arith.constant dense<0.000000e+00> : vector<16x32xf32>
    %34 = tpu.matmul %33, %29, %cst_13 {dimension_numbers = #tpu.dot_dimension_numbers<[1], [0], [0], [1], [0, 0, 1, 1], [], []>} : vector<16x32xf32>, vector<32x32xf32>, vector<16x32xf32> -> vector<16x32xf32>
    %35 = vector.extract_strided_slice %5 {offsets = [16, 0], sizes = [16, 32], strides = [1, 1]} : vector<32x32xf32> to vector<16x32xf32>
    %36 = vector.extract_strided_slice %6 {offsets = [16, 0], sizes = [16, 32], strides = [1, 1]} : vector<32x32xf32> to vector<16x32xf32>
    %cst_14 = arith.constant dense<0xFF800000> : vector<32xf32>
    %37 = vector.multi_reduction <maximumf>, %35, %cst_14 [0] : vector<16x32xf32> to vector<32xf32>
    %38 = vector.shape_cast %37 : vector<32xf32> to vector<1x32xf32>
    %39 = vector.broadcast %38 : vector<1x32xf32> to vector<16x32xf32>
    %40 = arith.subf %35, %39 : vector<16x32xf32>
    %41 = math.exp %40 : vector<16x32xf32>
    %cst_15 = arith.constant dense<0.000000e+00> : vector<32xf32>
    %42 = vector.multi_reduction <add>, %41, %cst_15 [0] : vector<16x32xf32> to vector<32xf32>
    %43 = vector.shape_cast %42 : vector<32xf32> to vector<1x32xf32>
    %44 = tpu.reciprocal %43 {approx = true} : vector<1x32xf32> -> vector<1x32xf32>
    %45 = vector.broadcast %44 : vector<1x32xf32> to vector<16x32xf32>
    %46 = arith.mulf %41, %45 : vector<16x32xf32>
    %47 = tpu.transpose %46, [1, 0] : vector<16x32xf32> -> vector<32x16xf32>
    %cst_16 = arith.constant dense<0.000000e+00> : vector<32x32xf32>
    %48 = tpu.matmul %47, %36, %cst_16 {dimension_numbers = #tpu.dot_dimension_numbers<[1], [0], [0], [1], [0, 0, 1, 1], [], []>} : vector<32x16xf32>, vector<16x32xf32>, vector<32x32xf32> -> vector<32x32xf32>
    %49 = arith.mulf %48, %1 : vector<32x32xf32>
    %c1 = arith.constant 1 : index
    %c0_17 = arith.constant 0 : index
    %c0_18 = arith.constant 0 : index
    %50 = vector.load %arg6[%c1, %c0_17, %c0_18] : memref<2x32x32xf32, #tpu.memory_space<vmem>>, vector<1x32x32xf32>
    %51 = vector.shape_cast %50 : vector<1x32x32xf32> to vector<32x32xf32>
    %52 = vector.shape_cast %49 : vector<32x32xf32> to vector<1x32x32xf32>
    tpu.vector_store %arg6[%c1, %c0_17, %c0_18], %52 {strides = array<i32>} : memref<2x32x32xf32, #tpu.memory_space<vmem>>, vector<1x32x32xf32>,
    %53 = vector.extract_strided_slice %14 {offsets = [16, 0], sizes = [16, 32], strides = [1, 1]} : vector<32x32xf32> to vector<16x32xf32>
    %cst_19 = arith.constant dense<0.000000e+00> : vector<16x32xf32>
    %54 = tpu.matmul %53, %49, %cst_19 {dimension_numbers = #tpu.dot_dimension_numbers<[1], [0], [0], [1], [0, 0, 1, 1], [], []>} : vector<16x32xf32>, vector<32x32xf32>, vector<16x32xf32> -> vector<16x32xf32>
    %55 = tpu.concatenate %34, %54 in 0 : vector<16x32xf32>, vector<16x32xf32> -> vector<32x32xf32>
    %c0_20 = arith.constant 0 : index
    %c0_21 = arith.constant 0 : index
    %56 = vector.load %arg2[%c0_20, %c0_21] : memref<32x32xf32, #tpu.memory_space<vmem>>, vector<32x32xf32>
    %cst_22 = arith.constant dense<0.000000e+00> : vector<32x32xf32>
    %57 = tpu.matmul %55, %56, %cst_22 {dimension_numbers = #tpu.dot_dimension_numbers<[1], [0], [0], [1], [0, 0, 1, 1], [], []>} : vector<32x32xf32>, vector<32x32xf32>, vector<32x32xf32> -> vector<32x32xf32>
    %c0_23 = arith.constant 0 : index
    %c0_24 = arith.constant 0 : index
    %58 = vector.load %arg3[%c0_23, %c0_24] : memref<1x32xf32, #tpu.memory_space<vmem>>, vector<1x32xf32>
    %59 = vector.broadcast %58 : vector<1x32xf32> to vector<32x32xf32>
    %60 = arith.addf %57, %59 : vector<32x32xf32>
    %c0_25 = arith.constant 0 : index
    %c0_26 = arith.constant 0 : index
    %61 = vector.load %arg5[%c0_25, %c0_26] : memref<32x32xf32, #tpu.memory_space<vmem>>, vector<32x32xf32>
    tpu.vector_store %arg5[%c0_25, %c0_26], %60 {strides = array<i32>} : memref<32x32xf32, #tpu.memory_space<vmem>>, vector<32x32xf32>,
    return
  }
}

</mosaic_0001>

<bundles_post_ra>
// kernel: efficient_attention.1
= control target key start
LH: loop header
LB: loop body
LE: loop exit
PB: predicated region body
PF: predicated region fallthrough
CT: control target
= control target key end

     0   :  { %12 = vsyncpa [#allocation3], 0  ;;  %s1523_s0 = inlined_call_operand.vmem [shape: f32[32,32], index: 0, kind: input, shape index: {}]   ;;  %s1524_s1 = inlined_call_operand.hbm [shape: f32[32,96], index: 1, kind: input, shape index: {}]   ;;  %s1525_s2 = inlined_call_operand.hbm [shape: f32[32,32], index: 2, kind: input, shape index: {}]   ;;  %s1526_s3 = inlined_call_operand.vmem [shape: f32[1,32], index: 3, kind: input, shape index: {}]   ;;  %s1527_s4 = inlined_call_operand.vmem [shape: f32[32,32], index: 4, kind: input, shape index: {}]   ;;  %s1528_s5 = inlined_call_operand.hbm [shape: f32[32,32], index: 5, kind: output, shape index: {0}]   ;;  %s1529_s6 = inlined_call_operand.vmem [shape: f32[2,32,32], index: 6, kind: output, shape index: {1}]  }
   0x1   :  { %13 = vsyncpa [#allocation6], 0 }
   0x2   :  { %14 = vsyncpa [#allocation4], 0  ;;  %s1276_s21 = smov [#allocation2]   ;;  %s1204_s25 = scalar_lea.hbm %s1524_s1, 512 }
   0x3   :  { %s22_s22 = sshll.u32 %s1276_s21, 4  ;;  %p1205_p0 = scmp.ne.s32.totalorder %s1524_s1, %s1204_s25  ;;  %s23_s22 = int_to_ptr.vmem [resolvable:$true] %s22_s22 }
   0x4   :  { %p1208_p1 = scmp.lt.u32.totalorder %s1204_s25, %s1524_s1 }
   0x6   :  { %p1210_p2 = pnand %p1208_p1, %p1205_p0 }
   0x8   :  { %1213 = shalt.err (!%p1210_p2)
}
   0x9   :  { %s1214_s30 = scalar_lea.vmem %s23_s22, 512  ;;  %p1219_p4 = scmp.lt.s32.totalorder %s23_s22, %s23_s22 }
   0xa   :  { %p1215_p3 = scmp.ne.s32.totalorder %s23_s22, %s1214_s30  ;;  %p1220_p5 = scmp.lt.s32.totalorder %s1214_s30, %s1214_s30 }
   0xc   :  { %p1221_p6 = por %p1220_p5, %p1219_p4 }
   0xe   :  { %p1222_p7 = pnand %p1221_p6, %p1215_p3 }
  0x10   :  { %1225 = shalt.err (!%p1222_p7)
}
  0x11   :  { %s1277_s7 = smov 128   ;;  %s1278_s8 = smov 8  }
  0x12   :  { %28 = dma.hbm_to_vmem [thread:$0]  %s1524_s1, 512, %s23_s22, [#allocation3], %s1277_s7, %s1277_s7, %s1278_s8  }
  0x13   :  { %s1279_s11 = smov [#allocation5]   ;;  %s1226_s15 = scalar_lea.hbm %s1525_s2, 512 }
  0x14   :  { %s34_s12 = sshll.u32 %s1279_s11, 4  ;;  %p1227_p8 = scmp.ne.s32.totalorder %s1525_s2, %s1226_s15  ;;  %s35_s12 = int_to_ptr.vmem [resolvable:$true] %s34_s12 }
  0x15   :  { %p1230_p9 = scmp.lt.u32.totalorder %s1226_s15, %s1525_s2 }
  0x17   :  { %p1232_p10 = pnand %p1230_p9, %p1227_p8 }
  0x19   :  { %1235 = shalt.err (!%p1232_p10)
}
  0x1a   :  { %s1236_s20 = scalar_lea.vmem %s35_s12, 512  ;;  %p1241_p12 = scmp.lt.s32.totalorder %s35_s12, %s35_s12 }
  0x1b   :  { %p1237_p11 = scmp.ne.s32.totalorder %s35_s12, %s1236_s20  ;;  %p1242_p13 = scmp.lt.s32.totalorder %s1236_s20, %s1236_s20 }
  0x1d   :  { %p1243_p0 = por %p1242_p13, %p1241_p12 }
  0x1f   :  { %p1244_p1 = pnand %p1243_p0, %p1237_p11 }
  0x21   :  { %1247 = shalt.err (!%p1244_p1)
}
  0x22   :  { %40 = dma.hbm_to_vmem [thread:$0]  %s1525_s2, 512, %s35_s12, [#allocation6], %s1277_s7, %s1277_s7, %s1278_s8  }
  0x23   :  { %1270 = dma.done.wait [#allocation3], 512  }
  0x24   :  { %1271 = vsyncadd [#allocation3], 4294966784 }
  0x25   :  { %1272 = dma.done.wait [#allocation6], 512  }
  0x26   :  { %1273 = vsyncadd [#allocation6], 4294966784  ;;  %vm63_vm0 = vcmask 261120   ;;  %v59_v0 = vld [vmem:[#allocation2] sm:$0xff]  ;;  %v60_v1 = vld [vmem:[#allocation2 + $0x8] sm:$0xff]  ;;  %vm290_vm1 = vcmask 523520  }
  0x27   :  { %v61_v2 = vld [vmem:[#allocation2 + $0x10] sm:$0xff]  ;;  %v1110_v3 = vpack.c.bf16 %v60_v1, %v59_v0  ;;  %v62_v4 = vld [vmem:[#allocation2 + $0x18] sm:$0xff]  ;;  %v51_v5 = vld [vmem:[%s1523_s0] sm:$0xff]  ;;  %s1281_s14 = smov 64   ;;  %vm366_vm2 = vcmask 130048  }
  0x28   :  { %v1114_v6 = vpack.c.bf16 %v62_v4, %v61_v2  ;;  %1034 = vmatprep.mubr.msk.f32.mxu0 %vm63_vm0, %v51_v5  ;;  %v52_v7 = vld [vmem:[%s1523_s0 + $0x8] sm:$0xff]  ;;  %v53_v8 = vld [vmem:[%s1523_s0 + $0x10] sm:$0xff]  ;;  %v54_v9 = vld [vmem:[%s1523_s0 + $0x18] sm:$0xff] }
  0x29   :  { %1111 = vmatprep.subr.bf16.mxu0 %v1110_v3  ;;  %v1393_v43 = vld [vmem:[%s1527_s4] sm:$0xff]  ;;  %v1398_v44 = vld [vmem:[%s1527_s4 + $0x8] sm:$0xff]  ;;  %v1403_v45 = vld [vmem:[%s1527_s4 + $0x10] sm:$0xff] }
  0x2a   :  { %1113 = vmatpush3.bf16.msra.mxu0 %v1110_v3  ;;  %v1118_v46 = vpack.c.bf16 %v1398_v44, %v1393_v43  ;;  %v1410_v47 = vld [vmem:[%s1527_s4 + $0x18] sm:$0xff]  ;;  %s1280_s4 = smov 96  }
  0x2b   :  { %1115 = vmatprep.subr.bf16.mxu0 %v1114_v6  ;;  %v1122_v48 = vpack.c.bf16 %v1410_v47, %v1403_v45 }
  0x2c   :  { %1119 = vmatprep.subr.bf16.mxu1 %v1118_v46 }
  0x2d   :  { %1121 = vmatpush3.bf16.msra.mxu1 %v1118_v46 }
  0x2e   :  { %1117 = vmatpush3.bf16.msra.mxu0 %v1114_v6  ;;  %1123 = vmatprep.subr.bf16.mxu1 %v1122_v48 }
  0x31   :  { %1035 = vmatmul.mubr.msk.f32.vlgmr.msra.gmra.mrb[0].mxu0 %vm63_vm0, %v52_v7  ;;  %1125 = vmatpush3.bf16.msra.mxu1 %v1122_v48 }
  0x32   :  { %1037 = vmatprep.mubr.msk.f32.mxu0 %vm63_vm0, %v53_v8 }
  0x35   :  { %1038 = vmatmul.mubr.msk.f32.gmra.mrb[2].mxu0 %vm63_vm0, %v54_v9 }
 0x104   :  { %v1364_v10 = vpop.f32.mrb[0].mxu0 }
 0x105   :  { %v292_v11 = vsel %vm290_vm1, %v1364_v10, -inf  ;;  %v1368_v12 = vpop.f32.mrb[1].mxu0  ;;  %v164_v21 = vsel %vm63_vm0, %v1364_v10, -inf }
 0x106   :  { %v291_v13 = vsel %vm290_vm1, %v1368_v12, -inf  ;;  %v161_v14 = vsel %vm63_vm0, %v1368_v12, -inf  ;;  %v1166_v15 = vpack.i.bf16 %v1364_v10, %v1368_v12 }
 0x107   :  { %v293_v16 = vmax.f32 %v291_v13, %v292_v11  ;;  %162 = vmax.xlane.f32.xlu1 %v161_v14 }
 0x108   :  { %v1376_v17 = vpop.f32.mrb[2].mxu0 }
 0x109   :  { %v294_v18 = vrot.slane %v293_v16, 4  ;;  %v554_v19 = vsel %vm290_vm1, %v1376_v17, -inf  ;;  %v1380_v20 = vpop.f32.mrb[3].mxu0 }
 0x10a   :  { %v553_v22 = vsel %vm290_vm1, %v1380_v20, -inf  ;;  %v1171_v63 = vpack.i.bf16 %v1376_v17, %v1380_v20 }
 0x10b   :  { %v295_v23 = vmax.f32 %v293_v16, %v294_v18  ;;  %165 = vmax.xlane.f32.xlu1 %v164_v21  ;;  %v555_v24 = vmax.f32 %v553_v22, %v554_v19  ;;  %v167_v18 = vsel %vm63_vm0, %v1380_v20, -inf  ;;  %v170_v19 = vsel %vm63_vm0, %v1376_v17, -inf }
 0x10d   :  { %v296_v25 = vrot.slane %v295_v23, 2  ;;  %v556_v26 = vrot.slane %v555_v24, 4 }
 0x10f   :  { %v297_v27 = vmax.f32 %v295_v23, %v296_v25  ;;  %v557_v28 = vmax.f32 %v555_v24, %v556_v26 }
 0x111   :  { %v298_v29 = vrot.slane %v297_v27, 1  ;;  %v558_v30 = vrot.slane %v557_v28, 2 }
 0x113   :  { %v299_v31 = vmax.f32 %v297_v27, %v298_v29  ;;  %v559_v32 = vmax.f32 %v557_v28, %v558_v30 }
 0x115   :  { %v300_v33 = vsub.f32 %v1368_v12, %v299_v31  ;;  %v301_v34 = vsub.f32 %v1364_v10, %v299_v31  ;;  %v560_v35 = vrot.slane %v559_v32, 1 }
 0x117   :  { %v302_v36 = vmul.f32 1.442695, %v300_v33  ;;  %v304_v37 = vmul.f32 1.442695, %v301_v34  ;;  %v561_v38 = vmax.f32 %v559_v32, %v560_v35 }
 0x119   :  { %1176 = vpow2.f32 %v302_v36  ;;  %v562_v39 = vsub.f32 %v1380_v20, %v561_v38  ;;  %v563_v40 = vsub.f32 %v1376_v17, %v561_v38 }
 0x11a   :  { %1178 = vpow2.f32 %v304_v37 }
 0x11b   :  { %v564_v41 = vmul.f32 1.442695, %v562_v39  ;;  %v566_v42 = vmul.f32 1.442695, %v563_v40 }
 0x11d   :  { %1180 = vpow2.f32 %v564_v41 }
 0x11e   :  { %1182 = vpow2.f32 %v566_v42 }
 0x123   :  { %v1177_v49 = vpop.eup %1176 }
 0x124   :  { %v1179_v50 = vpop.eup %1178  ;;  %v306_v51 = vsel %vm290_vm1, %v1177_v49, 0.0 }
 0x125   :  { %v307_v52 = vsel %vm290_vm1, %v1179_v50, 0.0 }
 0x126   :  { %v308_v53 = vadd.f32 %v307_v52, %v306_v51 }
 0x127   :  { %v1181_v54 = vpop.eup %1180 }
 0x128   :  { %v1183_v55 = vpop.eup %1182  ;;  %v568_v56 = vsel %vm290_vm1, %v1181_v54, 0.0  ;;  %v309_v57 = vrot.slane %v308_v53, 4 }
 0x129   :  { %v569_v58 = vsel %vm290_vm1, %v1183_v55, 0.0 }
 0x12a   :  { %v310_v59 = vadd.f32 %v309_v57, %v308_v53  ;;  %v570_v60 = vadd.f32 %v569_v58, %v568_v56 }
 0x12c   :  { %v311_v61 = vrot.slane %v310_v59, 2  ;;  %v571_v62 = vrot.slane %v570_v60, 4 }
 0x12e   :  { %v312_v0 = vadd.f32 %v311_v61, %v310_v59  ;;  %v572_v1 = vadd.f32 %v571_v62, %v570_v60 }
 0x130   :  { %v313_v2 = vrot.slane %v312_v0, 1  ;;  %v573_v3 = vrot.slane %v572_v1, 2 }
 0x132   :  { %v314_v4 = vadd.f32 %v313_v2, %v312_v0  ;;  %v574_v5 = vadd.f32 %v573_v3, %v572_v1 }
 0x134   :  { %1184 = vrcp.f32 %v314_v4  ;;  %v575_v6 = vrot.slane %v574_v5, 1 }
 0x136   :  { %v576_v7 = vadd.f32 %v575_v6, %v574_v5 }
 0x138   :  { %1186 = vrcp.f32 %v576_v7 }
 0x13e   :  { %v1185_v8 = vpop.eup %1184 }
 0x13f   :  { %v316_v9 = vmul.f32 %v1185_v8, %v1177_v49  ;;  %v317_v11 = vmul.f32 %v1185_v8, %v1179_v50  ;;  %v815_v8 = vld [vmem:[#allocation5] sm:$0xff] }
 0x141   :  { %320 = vrot.lane.b32.xlu0 %v316_v9, %s1280_s4  ;;  %v816_v9 = vld [vmem:[#allocation5 + $0x8] sm:$0xff] }
 0x142   :  { %v1187_v13 = vpop.eup %1186 }
 0x143   :  { %v578_v14 = vmul.f32 %v1187_v13, %v1181_v54  ;;  %v579_v16 = vmul.f32 %v1187_v13, %v1183_v55 }
 0x145   :  { %322 = vrot.lane.b32.xlu0 %v317_v11, %s1280_s4 }
 0x149   :  { %1167 = vrot.lane.b32.xlu0 %v1166_v15, %s1281_s14 }
 0x14d   :  { %582 = vrot.lane.b32.xlu0 %v578_v14, %s1280_s4  ;;  %v1150_v14 = vpack.c.bf16 %v816_v9, %v815_v8 }
 0x16c   :  { %168 = vmax.xlane.f32.xlu0 %v167_v18  ;;  %v817_v18 = vld [vmem:[#allocation5 + $0x10] sm:$0xff] }
 0x170   :  { %171 = vmax.xlane.f32.xlu0 %v170_v19  ;;  %v818_v19 = vld [vmem:[#allocation5 + $0x18] sm:$0xff] }
 0x186   :  { %584 = vrot.lane.b32.xlu0 %v579_v16, %s1280_s4 }
 0x194   :  { %v163_v21 = vpop.xlane.xlu1 %162 }
 0x195   :  { %v173_v22 = vsub.f32 %v1368_v12, %v163_v21  ;;  %v1154_v21 = vpack.c.bf16 %v818_v19, %v817_v18 }
 0x197   :  { %v177_v23 = vmul.f32 1.442695, %v173_v22 }
 0x198   :  { %v166_v24 = vpop.xlane.xlu1 %165 }
 0x199   :  { %1188 = vpow2.f32 %v177_v23  ;;  %v174_v25 = vsub.f32 %v1364_v10, %v166_v24 }
 0x19b   :  { %v179_v26 = vmul.f32 1.442695, %v174_v25 }
 0x19d   :  { %1190 = vpow2.f32 %v179_v26 }
 0x1a3   :  { %v1189_v15 = vpop.eup %1188 }
 0x1a4   :  { %1048 = vmatprep.mubr.msk.f32.mxu1 %vm63_vm0, %v1189_v15 }
 0x1a7   :  { %v1431_v27 = vpop.eup %1190 }
 0x1a8   :  { %1049 = vmatmul.mubr.msk.f32.vlgmr.msra.gmra.mrb[0].mxu1 %vm63_vm0, %v1431_v27 }
 0x1b3   :  { %v321_v28 = vpop.permute.xlu0 %320 }
 0x1b4   :  { %326 = vxpose.xlu1.b32.start [1/2] (short) (narrow) %v321_v28, 32 }
 0x1b7   :  { %v323_v29 = vpop.permute.xlu0 %322 }
 0x1b8   :  { %327 = vxpose.xlu1.b32.end [2/2] (short) (narrow) %v323_v29, 32 }
 0x1bb   :  { %v1168_v12 = vpop.permute.xlu0 %1167 }
 0x1bc   :  { %v1170_v30 = vunpack.i.h.bf16 %v1168_v12  ;;  %v1169_v31 = vunpack.i.l.bf16 %v1168_v12 }
 0x1be   :  { %v1126_v32 = vpack.c.bf16 %v1170_v30, %v1169_v31 }
 0x1bf   :  { %v583_v33 = vpop.permute.xlu0 %582 }
 0x1c0   :  { %1127 = vmatprep.subr.bf16.mxu0 %v1126_v32  ;;  %588 = vxpose.xlu0.b32.start [1/2] (short) (narrow) %v583_v33, 32 }
 0x1c1   :  { %1129 = vmatpush3.bf16.msra.mxu0 %v1126_v32 }
 0x1de   :  { %1172 = vrot.lane.b32.xlu1 %v1171_v63, %s1281_s14 }
 0x1f9   :  { %v169_v10 = vpop.xlane.xlu0 %168 }
 0x1fa   :  { %v175_v34 = vsub.f32 %v1380_v20, %v169_v10 }
 0x1fc   :  { %v181_v35 = vmul.f32 1.442695, %v175_v34 }
 0x1fd   :  { %v172_v36 = vpop.xlane.xlu0 %171 }
 0x1fe   :  { %1192 = vpow2.f32 %v181_v35  ;;  %v176_v37 = vsub.f32 %v1376_v17, %v172_v36 }
 0x200   :  { %v183_v38 = vmul.f32 1.442695, %v176_v37 }
 0x201   :  { %v585_v39 = vpop.permute.xlu0 %584 }
 0x202   :  { %1194 = vpow2.f32 %v183_v38  ;;  %589 = vxpose.xlu0.b32.end [2/2] (short) (narrow) %v585_v39, 32 }
 0x208   :  { %v1193_v40 = vpop.eup %1192 }
 0x209   :  { %1051 = vmatprep.mubr.msk.f32.mxu1 %vm63_vm0, %v1193_v40 }
 0x20c   :  { %v1439_v41 = vpop.eup %1194 }
 0x20d   :  { %1052 = vmatmul.mubr.msk.f32.gmra.mrb[2].mxu1 %vm63_vm0, %v1439_v41 }
 0x234   :  { %v342_v42 = vpop.trf.xlu1 }
 0x235   :  { %1058 = vmatprep.mubr.msk.f32.mxu0 %vm366_vm2, %v342_v42 }
 0x238   :  { %v343_v20 = vpop.trf.xlu1 }
 0x239   :  { %1059 = vmatmul.mubr.msk.f32.vlgmr.msra.gmra.mrb[4].mxu0 %vm366_vm2, %v343_v20 }
 0x23c   :  { %v344_v17 = vpop.trf.xlu1 }
 0x23d   :  { %1061 = vmatprep.mubr.msk.f32.mxu0 %vm366_vm2, %v344_v17 }
 0x240   :  { %v345_v46 = vpop.trf.xlu1 }
 0x241   :  { %1062 = vmatmul.mubr.msk.f32.gmra.mrb[6].mxu0 %vm366_vm2, %v345_v46 }
 0x250   :  { %v1173_v62 = vpop.permute.xlu1 %1172 }
 0x251   :  { %v1175_v2 = vunpack.i.h.bf16 %v1173_v62  ;;  %v1174_v3 = vunpack.i.l.bf16 %v1173_v62 }
 0x253   :  { %v1138_v11 = vpack.c.bf16 %v1175_v2, %v1174_v3 }
 0x27b   :  { %v1050_v48 = vpop.f32.mrb[0].mxu1 }
 0x27c   :  { %v263_v49 = vpop.f32.mrb[1].mxu1 }
 0x27d   :  { %1196 = vrcp.f32 %v263_v49 }
 0x27e   :  { %v604_v61 = vpop.trf.xlu0 }
 0x282   :  { %v605_v5 = vpop.trf.xlu0 }
 0x286   :  { %v606_v16 = vpop.trf.xlu0 }
 0x287   :  { %v1197_v50 = vpop.eup %1196 }
 0x288   :  { %v286_v51 = vmul.f32 %v1197_v50, %v1189_v15 }
 0x28a   :  { %1072 = vmatprep.mubr.msk.f32.mxu1 %vm63_vm0, %v286_v51  ;;  %v607_v22 = vpop.trf.xlu0 }
 0x2e0   :  { %v1053_v52 = vpop.f32.mrb[2].mxu1 }
 0x2e1   :  { %v273_v53 = vpop.f32.mrb[3].mxu1 }
 0x2e2   :  { %1198 = vrcp.f32 %v273_v53 }
 0x2e3   :  { %1200 = vrcp.f32 %v1050_v48 }
 0x2e4   :  { %1202 = vrcp.f32 %v1053_v52 }
 0x2ec   :  { %v1199_v54 = vpop.eup %1198 }
 0x2ed   :  { %v288_v55 = vmul.f32 %v1199_v54, %v1193_v40  ;;  %v1201_v7 = vpop.eup %1200 }
 0x2ee   :  { %v287_v13 = vmul.f32 %v1201_v7, %v1431_v27  ;;  %v1203_v31 = vpop.eup %1202 }
 0x2ef   :  { %1093 = vmatprep.mubr.msk.f32.mxu0 %vm63_vm0, %v288_v55 }
 0x30c   :  { %v1060_v56 = vpop.f32.mrb[4].mxu0 }
 0x30d   :  { %v465_v57 = vmul.f32 %v1060_v56, %v1398_v44  ;;  %v445_v58 = vpop.f32.mrb[5].mxu0 }
 0x30e   :  { %v464_v59 = vmul.f32 %v445_v58, %v1393_v43 }
 0x30f   :  { %469 = vst.msk [vmem:[%s1529_s6 + $0x8] sm:$0xff] %vm63_vm0, %v465_v57 }
 0x310   :  { %468 = vst.msk [vmem:[%s1529_s6] sm:$0xff] %vm63_vm0, %v464_v59  ;;  %v1130_v60 = vpack.c.bf16 %v465_v57, %v464_v59 }
 0x312   :  { %1131 = vmatprep.subr.bf16.mxu1 %v1130_v60 }
 0x313   :  { %1133 = vmatpush3.bf16.msra.mxu1 %v1130_v60 }
 0x314   :  { %v1063_v63 = vpop.f32.mrb[6].mxu0 }
 0x315   :  { %v467_v0 = vmul.f32 %v1063_v63, %v1410_v47  ;;  %v455_v1 = vpop.f32.mrb[7].mxu0 }
 0x316   :  { %v466_v4 = vmul.f32 %v455_v1, %v1403_v45 }
 0x317   :  { %471 = vst.msk [vmem:[%s1529_s6 + $0x18] sm:$0xff] %vm63_vm0, %v467_v0 }
 0x318   :  { %470 = vst.msk [vmem:[%s1529_s6 + $0x10] sm:$0xff] %vm63_vm0, %v466_v4  ;;  %v1134_v6 = vpack.c.bf16 %v467_v0, %v466_v4 }
 0x31a   :  { %1135 = vmatprep.subr.bf16.mxu1 %v1134_v6 }
 0x31b   :  { %1137 = vmatpush3.bf16.msra.mxu1 %v1134_v6 }
 0x31c   :  { %1139 = vmatprep.subr.bf16.mxu1 %v1138_v11 }
 0x31e   :  { %1073 = vmatmul.mubr.msk.f32.vlgmr.msra.gmra.mrb[4].mxu1 %vm63_vm0, %v287_v13 }
 0x31f   :  { %1141 = vmatpush3.bf16.msra.mxu1 %v1138_v11  ;;  %1079 = vmatprep.mubr.msk.f32.mxu1 %vm366_vm2, %v604_v61 }
 0x320   :  { %1151 = vmatprep.subr.bf16.mxu1 %v1150_v14 }
 0x322   :  { %1080 = vmatmul.mubr.msk.f32.vlgmr.msra.gmra.mrb[6].mxu1 %vm366_vm2, %v605_v5 }
 0x323   :  { %1082 = vmatprep.mubr.msk.f32.mxu1 %vm366_vm2, %v606_v16  ;;  %1153 = vmatpush3.bf16.msra.mxu1 %v1150_v14 }
 0x324   :  { %1155 = vmatprep.subr.bf16.mxu1 %v1154_v21 }
 0x326   :  { %1083 = vmatmul.mubr.msk.f32.gmra.mrb[8].mxu1 %vm366_vm2, %v607_v22 }
 0x327   :  { %1157 = vmatpush3.bf16.msra.mxu1 %v1154_v21 }
 0x3f1   :  { %v1074_v23 = vpop.f32.mrb[4].mxu1 }
 0x3f2   :  { %v544_v24 = vpop.f32.mrb[5].mxu1 }
 0x3f3   :  { %1104 = vmatprep.mubr.msk.f32.mxu1 %vm63_vm0, %v544_v24 }
 0x3f4   :  { %1105 = vmatmul.mubr.msk.f32.vlgmr.msra.gmra.mrb[10].mxu1 %vm63_vm0, %v1074_v23 }
 0x3f5   :  { %v1081_v25 = vpop.f32.mrb[6].mxu1 }
 0x3f6   :  { %v726_v26 = vmul.f32 %v1081_v25, %v1398_v44  ;;  %v706_v15 = vpop.f32.mrb[7].mxu1 }
 0x3f7   :  { %v725_v27 = vmul.f32 %v706_v15, %v1393_v43 }
 0x3f8   :  { %968 = vst.msk [vmem:[%s1529_s6 + $0x28] sm:$0xff] %vm63_vm0, %v726_v26 }
 0x3f9   :  { %967 = vst.msk [vmem:[%s1529_s6 + $0x20] sm:$0xff] %vm63_vm0, %v725_v27  ;;  %v1142_v28 = vpack.c.bf16 %v726_v26, %v725_v27  ;;  %v1084_v29 = vpop.f32.mrb[8].mxu1 }
 0x3fa   :  { %v728_v12 = vmul.f32 %v1084_v29, %v1410_v47  ;;  %v716_v30 = vpop.f32.mrb[9].mxu1  ;;  %v289_v47 = vmul.f32 %v1203_v31, %v1439_v41 }
 0x3fb   :  { %v727_v44 = vmul.f32 %v716_v30, %v1403_v45  ;;  %1143 = vmatprep.subr.bf16.mxu0 %v1142_v28  ;;  %v973_v45 = vld [vmem:[%s1526_s3] ss:$0 sm:$0xff] }
 0x3fc   :  { %970 = vst.msk [vmem:[%s1529_s6 + $0x38] sm:$0xff] %vm63_vm0, %v728_v12  ;;  %1145 = vmatpush3.bf16.msra.mxu0 %v1142_v28 }
 0x3fd   :  { %969 = vst.msk [vmem:[%s1529_s6 + $0x30] sm:$0xff] %vm63_vm0, %v727_v44  ;;  %v1146_v43 = vpack.c.bf16 %v728_v12, %v727_v44  ;;  %s1282_s6 = smov [#allocation7]  }
 0x3fe   :  { %s932_s30 = sshll.u32 %s1282_s6, 4  ;;  %s933_s30 = int_to_ptr.vmem [resolvable:$true] %s932_s30 }
 0x3ff   :  { %1147 = vmatprep.subr.bf16.mxu0 %v1146_v43  ;;  %s1248_s3 = scalar_lea.vmem %s933_s30, 512  ;;  %p1253_p3 = scmp.lt.s32.totalorder %s933_s30, %s933_s30 }
 0x400   :  { %1149 = vmatpush3.bf16.msra.mxu0 %v1146_v43  ;;  %p1249_p2 = scmp.ne.s32.totalorder %s933_s30, %s1248_s3  ;;  %p1254_p4 = scmp.lt.s32.totalorder %s1248_s3, %s1248_s3 }
 0x402   :  { %p1255_p5 = por %p1254_p4, %p1253_p3 }
 0x403   :  { %1094 = vmatmul.mubr.msk.f32.vlgmr.msra.gmra.mrb[8].mxu0 %vm63_vm0, %v289_v47 }
 0x404   :  { %p1256_p6 = pnand %p1255_p5, %p1249_p2 }
 0x4c7   :  { %v1106_v32 = vpop.f32.mrb[10].mxu1 }
 0x4c8   :  { %v910_v33 = vadd.f32 %v1106_v32, %v973_v45  ;;  %v904_v10 = vpop.f32.mrb[11].mxu1 }
 0x4c9   :  { %v905_v34 = vadd.f32 %v973_v45, %v904_v10 }
 0x4ca   :  { %924 = vst.msk [vmem:[#allocation7 + $0x8] sm:$0xff] %vm63_vm0, %v910_v33 }
 0x4cb   :  { %923 = vst.msk [vmem:[#allocation7] sm:$0xff] %vm63_vm0, %v905_v34 }
 0x4d6   :  { %v1095_v35 = vpop.f32.mrb[8].mxu0 }
 0x4d7   :  { %v806_v36 = vpop.f32.mrb[9].mxu0 }
 0x4d8   :  { %1107 = vmatprep.mubr.msk.f32.mxu1 %vm63_vm0, %v806_v36 }
 0x4d9   :  { %1108 = vmatmul.mubr.msk.f32.gmra.mrb[12].mxu1 %vm63_vm0, %v1095_v35 }
 0x5ac   :  { %v1109_v37 = vpop.f32.mrb[12].mxu1 }
 0x5ad   :  { %v920_v38 = vadd.f32 %v1109_v37, %v973_v45  ;;  %v914_v39 = vpop.f32.mrb[13].mxu1 }
 0x5ae   :  { %v915_v40 = vadd.f32 %v973_v45, %v914_v39 }
 0x5af   :  { %926 = vst.msk [vmem:[#allocation7 + $0x18] sm:$0xff] %vm63_vm0, %v920_v38 }
 0x5b0   :  { %925 = vst.msk [vmem:[#allocation7 + $0x10] sm:$0xff] %vm63_vm0, %v915_v40 }
 0x5b1   :  { %1259 = shalt.err (!%p1256_p6)
}
 0x5b2   :  { %s1260_s11 = scalar_lea.hbm %s1528_s5, 512 }
 0x5b3   :  { %p1261_p7 = scmp.ne.s32.totalorder %s1528_s5, %s1260_s11  ;;  %p1264_p8 = scmp.lt.u32.totalorder %s1260_s11, %s1528_s5 }
 0x5b5   :  { %p1266_p9 = pnand %p1264_p8, %p1261_p7 }
 0x5b7   :  { %1269 = shalt.err (!%p1266_p9)
}
 0x5b8   :  { %938 = dma.vmem_to_hbm [thread:$0]  %s933_s30, 512, %s1528_s5, [#allocation4], %s1277_s7, %s1277_s7, %s1278_s8  }
 0x5b9   :  { %1274 = dma.done.wait [#allocation4], 512  }
 0x5ba   :  { %1275 = vsyncadd [#allocation4], 4294966784 }
 0x5bb   :  { %946 = vsyncpa [#allocation3], 1 }
 0x5bc   :  { %947 = vsyncpa [#allocation6], 1 }
 0x5bd   :  { %948 = vsyncpa [#allocation4], 1 }

</bundles_post_ra>
